<compile_context>
chip_gen: v7x
topology: tpu7x:2x2x1
jax: 0.10.0
libtpu: 0.0.40
codegen_flags: <defaults>
</compile_context>

<pallas_src>
import functools

import jax
import jax.numpy as jnp
from jax.experimental import pallas as pl
from jax.experimental.pallas import tpu as pltpu


def _round_up(x, m):
    return ((x + m - 1) // m) * m


def mlp_kernel(x_ref, w1_ref, b1_ref, w2_ref, b2_ref, o_ref):
    # Hidden layer: (TB, n_obv) @ (n_obv, 256) on the MXU, f32 accumulation.
    h = jnp.dot(x_ref[...], w1_ref[...], preferred_element_type=jnp.float32)
    h = jnp.maximum(h + b1_ref[...], 0.0)          # bias + ReLU in f32

    # Output layer: (TB, 256) @ (256, n_out_pad); feed MXU same dtype as w2.
    y = jnp.dot(h.astype(w2_ref.dtype), w2_ref[...],
                preferred_element_type=jnp.float32)
    o_ref[...] = (y + b2_ref[...]).astype(o_ref.dtype)


@functools.partial(jax.jit, static_argnames=("tb", "use_bf16"))
def network_forward(x, w1, b1, w2, b2, *, tb=512, use_bf16=True):
    """x: (B, n_obv) f32. Returns (B, n_action) f32."""
    B, n_obv = x.shape
    hidden = w1.shape[1]
    n_action = w2.shape[1]
    assert w1.shape == (n_obv, hidden)
    assert b1.shape == (1, hidden)
    assert w2.shape == (hidden, n_action)
    assert b2.shape == (1, n_action)

    # ---- lane-dense (multiple-of-128) output width ----
    n_out = _round_up(n_action, 128)
    w2p = jnp.pad(w2, ((0, 0), (0, n_out - n_action)))
    b2p = jnp.pad(b2, ((0, 0), (0, n_out - n_action)))

    # ---- batch tiling: sublane-align, then round up to the batch tile ----
    b_pad = _round_up(B, 8)
    tb_eff = min(tb, b_pad)          # tb_eff is a multiple of 8 either way
    b_pad = _round_up(b_pad, tb_eff)
    xp = jnp.pad(x, ((0, b_pad - B), (0, 0)))

    # ---- compute dtypes: bf16 MXU operands, f32 accumulation / bias / ReLU ----
    cdt = jnp.bfloat16 if use_bf16 else jnp.float32
    xp = xp.astype(cdt)
    w1c = w1.astype(cdt)
    w2c = w2p.astype(cdt)
    b1c = b1.astype(jnp.float32)
    b2c = b2p.astype(jnp.float32)

    grid = (b_pad // tb_eff,)

    cost = pl.CostEstimate(
        flops=2 * b_pad * (n_obv * hidden + hidden * n_out),
        transcendentals=0,
        bytes_accessed=(xp.size * xp.dtype.itemsize
                        + w1c.size * w1c.dtype.itemsize
                        + w2c.size * w2c.dtype.itemsize
                        + b1c.size * 4 + b2c.size * 4
                        + b_pad * n_out * 4),
    )

    out = pl.pallas_call(
        mlp_kernel,
        out_shape=jax.ShapeDtypeStruct((b_pad, n_out), jnp.float32),
        grid_spec=pl.GridSpec(
            grid=grid,
            in_specs=[
                pl.BlockSpec((tb_eff, n_obv), lambda i: (i, 0)),   # x: per-step tile
                pl.BlockSpec((n_obv, hidden), lambda i: (0, 0)),   # w1: resident
                pl.BlockSpec((1, hidden), lambda i: (0, 0)),       # b1: resident
                pl.BlockSpec((hidden, n_out), lambda i: (0, 0)),   # w2: resident
                pl.BlockSpec((1, n_out), lambda i: (0, 0)),        # b2: resident
            ],
            out_specs=pl.BlockSpec((tb_eff, n_out), lambda i: (i, 0)),
        ),
        compiler_params=pltpu.CompilerParams(
            dimension_semantics=("parallel",),
        ),
        cost_estimate=cost,
    )(xp, w1c, b1c, w2c, b2c)

    return out[:B, :n_action]


def init_params(key, n_obv, n_action, hidden=256):
    """Deterministic init mimicking torch.nn.Linear default (uniform +/-1/sqrt(fan_in))."""
    k1, k2, k3, k4 = jax.random.split(key, 4)
    bound1 = 1.0 / jnp.sqrt(jnp.float32(n_obv))
    bound2 = 1.0 / jnp.sqrt(jnp.float32(hidden))
    # stored as (in_features, out_features) — transpose of torch's (out, in)
    w1 = jax.random.uniform(k1, (n_obv, hidden), jnp.float32, -bound1, bound1)
    b1 = jax.random.uniform(k2, (1, hidden), jnp.float32, -bound1, bound1)
    w2 = jax.random.uniform(k3, (hidden, n_action), jnp.float32, -bound2, bound2)
    b2 = jax.random.uniform(k4, (1, n_action), jnp.float32, -bound2, bound2)
    return w1, b1, w2, b2


def _reference(x, w1, b1, w2, b2, use_bf16=True):
    """Same math / dtype path as the kernel, in plain JAX."""
    if use_bf16:
        x = x.astype(jnp.bfloat16).astype(jnp.float32)
        w1 = w1.astype(jnp.bfloat16).astype(jnp.float32)
        w2 = w2.astype(jnp.bfloat16).astype(jnp.float32)
    h = jnp.maximum(
        jnp.matmul(x, w1, precision=jax.lax.Precision.HIGHEST) + b1, 0.0)
    if use_bf16:
        h = h.astype(jnp.bfloat16).astype(jnp.float32)
    return jnp.matmul(h, w2, precision=jax.lax.Precision.HIGHEST) + b2


# TODO(synk): save()/load() (torch.save / torch.load checkpoint I/O) are host-side
# utilities with no kernel equivalent; only the forward pass is implemented.

if __name__ == "__main__":
    n_obv, n_action, batch, hidden = 16, 4, 8, 256

    key = jax.random.PRNGKey(0)
    kx, kp, kx2 = jax.random.split(key, 3)
    x = jax.random.normal(kx, (batch, n_obv), jnp.float32)
    w1, b1, w2, b2 = init_params(kp, n_obv, n_action, hidden)

    # --- small batch (single grid step after padding) ---
    out = network_forward(x, w1, b1, w2, b2)
    out = jax.block_until_ready(out)
    assert out.shape == (batch, n_action)

    ref = _reference(x, w1, b1, w2, b2, use_bf16=True)
    assert jnp.allclose(out, ref, atol=2e-3, rtol=2e-3), "mismatch vs bf16-path ref"

    ref32 = _reference(x, w1, b1, w2, b2, use_bf16=False)
    assert jnp.allclose(out, ref32, atol=3e-2, rtol=3e-2), "mismatch vs f32 ref"

    # --- larger, non-aligned batch: exercises batch tiling + padding ---
    batch2, tb2 = 200, 64
    x2 = jax.random.normal(kx2, (batch2, n_obv), jnp.float32)
    out2 = jax.block_until_ready(network_forward(x2, w1, b1, w2, b2, tb=tb2))
    assert out2.shape == (batch2, n_action)
    ref2 = _reference(x2, w1, b1, w2, b2, use_bf16=True)
    assert jnp.allclose(out2, ref2, atol=2e-3, rtol=2e-3), "mismatch (tiled batch)"

    print("KERNEL_OK")
</pallas_src>

<mosaic_0001>
module attributes {stable_mosaic.version = 11 : i64} {
  func.func @mlp_kernel(%arg0: i32, %arg1: memref<8x16xbf16, #tpu.memory_space<vmem>>, %arg2: memref<16x256xbf16, #tpu.memory_space<vmem>>, %arg3: memref<1x256xf32, #tpu.memory_space<vmem>>, %arg4: memref<256x128xbf16, #tpu.memory_space<vmem>>, %arg5: memref<1x128xf32, #tpu.memory_space<vmem>>, %arg6: memref<8x128xf32, #tpu.memory_space<vmem>>) attributes {dimension_semantics = [#tpu.dimension_semantics<parallel>], iteration_bounds = array<i64: 1>, scalar_prefetch = 0 : i64, scratch_operands = 0 : i64, tpu.core_type = #tpu.core_type<tc>, window_params = [{transform_indices = @transform_0, window_bounds = array<i64: 8, 16>}, {pipeline_mode = #tpu.pipeline_mode<synchronous>, transform_indices = @transform_1, window_bounds = array<i64: 16, 256>}, {pipeline_mode = #tpu.pipeline_mode<synchronous>, transform_indices = @transform_2, window_bounds = array<i64: 1, 256>}, {pipeline_mode = #tpu.pipeline_mode<synchronous>, transform_indices = @transform_3, window_bounds = array<i64: 256, 128>}, {pipeline_mode = #tpu.pipeline_mode<synchronous>, transform_indices = @transform_4, window_bounds = array<i64: 1, 128>}, {transform_indices = @transform_5, window_bounds = array<i64: 8, 128>}]} {
    %c0 = arith.constant 0 : index
    %c0_0 = arith.constant 0 : index
    %0 = vector.load %arg1[%c0, %c0_0] : memref<8x16xbf16, #tpu.memory_space<vmem>>, vector<8x16xbf16>
    %c0_1 = arith.constant 0 : index
    %c0_2 = arith.constant 0 : index
    %1 = vector.load %arg2[%c0_1, %c0_2] : memref<16x256xbf16, #tpu.memory_space<vmem>>, vector<16x256xbf16>
    %cst = arith.constant dense<0.000000e+00> : vector<8x256xf32>
    %2 = tpu.matmul %0, %1, %cst {dimension_numbers = #tpu.dot_dimension_numbers<[1], [0], [0], [1], [0, 0, 1, 1], [], []>} : vector<8x16xbf16>, vector<16x256xbf16>, vector<8x256xf32> -> vector<8x256xf32>
    %c0_3 = arith.constant 0 : index
    %c0_4 = arith.constant 0 : index
    %3 = vector.load %arg3[%c0_3, %c0_4] : memref<1x256xf32, #tpu.memory_space<vmem>>, vector<1x256xf32>
    %4 = vector.broadcast %3 : vector<1x256xf32> to vector<8x256xf32>
    %5 = arith.addf %2, %4 : vector<8x256xf32>
    %cst_5 = arith.constant 0.000000e+00 : f32
    %6 = vector.broadcast %cst_5 : f32 to vector<8x256xf32>
    %7 = arith.maximumf %5, %6 : vector<8x256xf32>
    %8 = arith.truncf %7 : vector<8x256xf32> to vector<8x256xbf16>
    %c0_6 = arith.constant 0 : index
    %c0_7 = arith.constant 0 : index
    %9 = vector.load %arg4[%c0_6, %c0_7] : memref<256x128xbf16, #tpu.memory_space<vmem>>, vector<256x128xbf16>
    %cst_8 = arith.constant dense<0.000000e+00> : vector<8x128xf32>
    %10 = tpu.matmul %8, %9, %cst_8 {dimension_numbers = #tpu.dot_dimension_numbers<[1], [0], [0], [1], [0, 0, 1, 1], [], []>} : vector<8x256xbf16>, vector<256x128xbf16>, vector<8x128xf32> -> vector<8x128xf32>
    %c0_9 = arith.constant 0 : index
    %c0_10 = arith.constant 0 : index
    %11 = vector.load %arg5[%c0_9, %c0_10] : memref<1x128xf32, #tpu.memory_space<vmem>>, vector<1x128xf32>
    %12 = vector.broadcast %11 : vector<1x128xf32> to vector<8x128xf32>
    %13 = arith.addf %10, %12 : vector<8x128xf32>
    %c0_11 = arith.constant 0 : index
    %c0_12 = arith.constant 0 : index
    %14 = vector.load %arg6[%c0_11, %c0_12] : memref<8x128xf32, #tpu.memory_space<vmem>>, vector<8x128xf32>
    tpu.vector_store %arg6[%c0_11, %c0_12], %13 {strides = array<i32>} : memref<8x128xf32, #tpu.memory_space<vmem>>, vector<8x128xf32>,
    return
  }
  func.func @transform_0(%arg0: i32) -> (i32, i32) {
    %c0_i32 = arith.constant 0 : i32
    %c0_i32_0 = arith.constant 0 : i32
    return %arg0, %c0_i32 : i32, i32
  }
  func.func @transform_1(%arg0: i32) -> (i32, i32) {
    %c0_i32 = arith.constant 0 : i32
    %c0_i32_0 = arith.constant 0 : i32
    %c0_i32_1 = arith.constant 0 : i32
    return %c0_i32, %c0_i32_0 : i32, i32
  }
  func.func @transform_2(%arg0: i32) -> (i32, i32) {
    %c0_i32 = arith.constant 0 : i32
    %c0_i32_0 = arith.constant 0 : i32
    %c0_i32_1 = arith.constant 0 : i32
    return %c0_i32, %c0_i32_0 : i32, i32
  }
  func.func @transform_3(%arg0: i32) -> (i32, i32) {
    %c0_i32 = arith.constant 0 : i32
    %c0_i32_0 = arith.constant 0 : i32
    %c0_i32_1 = arith.constant 0 : i32
    return %c0_i32, %c0_i32_0 : i32, i32
  }
  func.func @transform_4(%arg0: i32) -> (i32, i32) {
    %c0_i32 = arith.constant 0 : i32
    %c0_i32_0 = arith.constant 0 : i32
    %c0_i32_1 = arith.constant 0 : i32
    return %c0_i32, %c0_i32_0 : i32, i32
  }
  func.func @transform_5(%arg0: i32) -> (i32, i32) {
    %c0_i32 = arith.constant 0 : i32
    %c0_i32_0 = arith.constant 0 : i32
    return %arg0, %c0_i32 : i32, i32
  }
}

</mosaic_0001>

<bundles_post_ra>
// kernel: network_forward.1
= control target key start
LH: loop header
LB: loop body
LE: loop exit
PB: predicated region body
PF: predicated region fallthrough
CT: control target
= control target key end

     0   :  { %v337_v1 = vmov 0   ;;  %vm46_vm0 = vcmask 130048   ;;  %v26_v20 = vlaneseq  ;;  %s434_s1 = inlined_call_operand.vmem [shape: bf16[16,256], index: 1, kind: input, shape index: {}]   ;;  %s435_s0 = inlined_call_operand.vmem [shape: bf16[8,16], index: 0, kind: input, shape index: {}]   ;;  %s436_s3 = inlined_call_operand.vmem [shape: bf16[256,128], index: 3, kind: input, shape index: {}]   ;;  %s437_s2 = inlined_call_operand.vmem [shape: f32[1,256], index: 2, kind: input, shape index: {}]   ;;  %s438_s4 = inlined_call_operand.vmem [shape: f32[1,128], index: 4, kind: input, shape index: {}]   ;;  %s439_s5 = inlined_call_operand.vmem [shape: f32[8,128], index: 5, kind: output, shape index: {}]  }
   0x1   :  { %v318_v0 = vld [vmem:[%s434_s1 + $0x4] ss:$8 sps:$4 sm:$0xff]   ;;  %82 = vmatprep.mubr.bf16.mxu0 %v337_v1  ;;  %v320_v2 = vld [vmem:[%s434_s1] ss:$8 sps:$4 sm:$0xff]   ;;  %v325_v8 = vld [vmem:[%s436_s3 + $0x50] sm:$0xff]  }
   0x2   :  { %v21_v3 = vld [vmem:[%s435_s0] sm:$0xf]  ;;  %50 = vmatprep.subr.bf16.mxu0 %v318_v0  ;;  %v323_v6 = vld [vmem:[%s436_s3 + $0x48] sm:$0xff]   ;;  %v326_v9 = vld [vmem:[%s436_s3 + $0x10] sm:$0xff]   ;;  %v27_v21 = vshrl.u32 %v26_v20, 7 }
   0x3   :  { %v321_v4 = vld [vmem:[%s436_s3 + $0x40] sm:$0xff]   ;;  %51 = vmatpush1.bf16.msra.mxu0 %v320_v2  ;;  %v324_v7 = vld [vmem:[%s436_s3 + $0x8] sm:$0xff]   ;;  %v327_v10 = vld [vmem:[%s436_s3 + $0x58] sm:$0xff]  }
   0x4   :  { %v322_v5 = vld [vmem:[%s436_s3] sm:$0xff]   ;;  %295 = vmatprep.subr.bf16.mxu1 %v321_v4  ;;  %v328_v11 = vld [vmem:[%s436_s3 + $0x18] sm:$0xff]   ;;  %v331_v14 = vld [vmem:[%s436_s3 + $0x68] sm:$0xff]   ;;  %v28_v22 = vsub.s32 0, %v27_v21  ;;  %v32_v24 = vsub.s32 1, %v27_v21 }
   0x5   :  { %296 = vmatpush3.bf16.msra.mxu1 %v322_v5  ;;  %v329_v12 = vld [vmem:[%s436_s3 + $0x60] sm:$0xff]   ;;  %v332_v15 = vld [vmem:[%s436_s3 + $0x28] sm:$0xff]   ;;  %v333_v16 = vld [vmem:[%s436_s3 + $0x70] sm:$0xff]  }
   0x6   :  { %277 = vmatmul.mubr.msk.bf16.vlgmr.msra.gmra.mrb[0].mxu0 %vm46_vm0, %v21_v3  ;;  %297 = vmatprep.subr.bf16.mxu1 %v323_v6  ;;  %v330_v13 = vld [vmem:[%s436_s3 + $0x20] sm:$0xff]   ;;  %v334_v17 = vld [vmem:[%s436_s3 + $0x30] sm:$0xff]   ;;  %v335_v18 = vld [vmem:[%s436_s3 + $0x78] sm:$0xff]  }
   0x7   :  { %v336_v19 = vld [vmem:[%s436_s3 + $0x38] sm:$0xff]   ;;  %v24_v23 = vld [vmem:[%s437_s2] sm:$0x3] }
   0x8   :  { %v29_v25 = vrot.slane %v24_v23, %v28_v22  ;;  %v33_v26 = vrot.slane %v24_v23, %v32_v24  ;;  %v278_v38 = vld [vmem:[%s438_s4] ss:$0 sm:$0xff] }
   0x9   :  { %298 = vmatpush3.bf16.msra.mxu1 %v324_v7 }
   0xa   :  { %299 = vmatprep.subr.bf16.mxu1 %v325_v8 }
   0xd   :  { %300 = vmatpush3.bf16.msra.mxu1 %v326_v9 }
   0xe   :  { %301 = vmatprep.subr.bf16.mxu1 %v327_v10 }
  0x11   :  { %302 = vmatpush3.bf16.msra.mxu1 %v328_v11 }
  0x12   :  { %303 = vmatprep.subr.bf16.mxu1 %v329_v12 }
  0x15   :  { %304 = vmatpush3.bf16.msra.mxu1 %v330_v13 }
  0x16   :  { %305 = vmatprep.subr.bf16.mxu1 %v331_v14 }
  0x19   :  { %306 = vmatpush3.bf16.msra.mxu1 %v332_v15 }
  0x1a   :  { %307 = vmatprep.subr.bf16.mxu1 %v333_v16 }
  0x1d   :  { %308 = vmatpush3.bf16.msra.mxu1 %v334_v17 }
  0x1e   :  { %309 = vmatprep.subr.bf16.mxu1 %v335_v18 }
  0x21   :  { %310 = vmatpush3.bf16.msra.mxu1 %v336_v19 }
  0xd9   :  { %v84_v27 = vpop.f32.mrb[0].mxu0 }
  0xda   :  { %v85_v28 = vadd.f32 %v84_v27, %v29_v25  ;;  %v86_v29 = vpop.f32.mrb[1].mxu0 }
  0xdb   :  { %v87_v30 = vadd.f32 %v86_v29, %v33_v26  ;;  %v88_v31 = vpop.f32.mrb[2].mxu0 }
  0xdc   :  { %v91_v32 = vmax.f32 %v85_v28, 0.0  ;;  %v89_v33 = vpop.f32.mrb[3].mxu0 }
  0xdd   :  { %v92_v34 = vmax.f32 %v87_v30, 0.0 }
  0xde   :  { %v93_v36 = vpack.c.bf16 %v91_v32, %v91_v32 }
  0xdf   :  { %v94_v35 = vpack.c.bf16 %v92_v34, %v92_v34 }
  0xe1   :  { %262 = vmatprep.mubr.bf16.mxu1 %v94_v35 }
  0xe2   :  { %263 = vmatmul.mubr.bf16.vlgmr.msra.gmra.mrb[0].mxu1 %v93_v36 }
 0x1b5   :  { %v311_v37 = vpop.f32.mrb[0].mxu1 }
 0x1b6   :  { %v312_v39 = vpop.f32.mrb[1].mxu1 }
 0x1b7   :  { %v313_v40 = vadd.f32 %v312_v39, %v311_v37  ;;  %v314_v41 = vpop.f32.mrb[2].mxu1 }
 0x1b8   :  { %v315_v42 = vpop.f32.mrb[3].mxu1 }
 0x1b9   :  { %v265_v43 = vadd.f32 %v313_v40, %v278_v38 }
 0x1bb   :  { %270 = vst [vmem:[%s439_s5] sm:$0xff] %v265_v43 }

</bundles_post_ra>
